<compile_context>
chip_gen: v7x
topology: tpu7x:2x2x1
jax: 0.10.0
libtpu: 0.0.40
codegen_flags: <defaults>
</compile_context>

<pallas_src>
import math
import jax
import jax.numpy as jnp
from jax.experimental import pallas as pl
from jax.experimental.pallas import tpu as pltpu


def _block_diag_gate_major(w):
    """[G, K, 4H] group weights -> [G*K, 4*G*H] block-diagonal, gate-major cols.

    Output column layout: [ i (G*H) | f (G*H) | o (G*H) | cand (G*H) ], matching
    the module's [i | f | o | cand] per-group ordering. Off-diagonal blocks are
    exact zeros, so groups cannot leak into each other.
    """
    G, K, H4 = w.shape
    H = H4 // 4
    w4 = w.reshape(G, K, 4, H)                       # per-group, per-gate
    out = jnp.zeros((G, K, 4, G, H), dtype=w.dtype)
    g_idx = jnp.arange(G)
    out = out.at[g_idx, :, :, g_idx, :].set(w4)      # place group g on its diagonal block
    return out.reshape(G * K, 4 * G * H)


def _group_lstm_seq_kernel(x_ref, h0_ref, c0_ref, wx_ref, wh_ref,
                           hseq_ref, c_last_ref, h_scr, c_scr):
    # x_ref:    (1, B, G*I) f32       h0/c0_ref: (B, G*H) f32
    # wx_ref:   (G*I, 4*G*H) f32      wh_ref:    (G*H, 4*G*H) f32
    # hseq_ref: (1, B, G*H) f32       c_last_ref:(B, G*H) f32
    # h_scr/c_scr: VMEM (B, G*H) f32 carried across grid steps.
    t = pl.program_id(0)
    GH = h_scr.shape[-1]

    @pl.when(t == 0)
    def _():
        h_scr[...] = h0_ref[...]
        c_scr[...] = c0_ref[...]

    # One MXU matmul per operand stream; preact is gate-major [i | f | o | cand].
    preact = jnp.dot(x_ref[0], wx_ref[...], preferred_element_type=jnp.float32)
    preact = preact + jnp.dot(h_scr[...], wh_ref[...],
                              preferred_element_type=jnp.float32)

    i_g = jax.nn.sigmoid(preact[:, :GH])
    f_g = jax.nn.sigmoid(preact[:, GH:2 * GH])
    o_g = jax.nn.sigmoid(preact[:, 2 * GH:3 * GH])
    cand = jnp.tanh(preact[:, 3 * GH:])

    c_next = c_scr[...] * f_g + i_g * cand          # whole [B, G*H] slab, f32
    h_next = o_g * jnp.tanh(c_next)

    c_scr[...] = c_next
    h_scr[...] = h_next

    # Lane-dense full-width stores (G*H = 128 lanes) -> unmasked vst.
    hseq_ref[0] = h_next.astype(hseq_ref.dtype)
    c_last_ref[...] = c_next.astype(c_last_ref.dtype)  # resident; written back after last step


def group_lstm_scan(xs, h0, c0, wx, wh):
    """Run T GroupLSTMCell steps in one pallas_call.

    Args:
      xs: [T, B, G, input_size]
      h0, c0: [B, G, hidden_size]
      wx: [G, input_size, 4*hidden_size]
      wh: [G, hidden_size, 4*hidden_size]
    Returns:
      h_seq [T, B, G, hidden_size], c_last [B, G, hidden_size]
    """
    T, B, G, I = xs.shape
    H = h0.shape[-1]
    assert h0.shape == (B, G, H) and c0.shape == (B, G, H)
    assert wx.shape == (G, I, 4 * H) and wh.shape == (G, H, 4 * H)
    GI, GH = G * I, G * H

    # Parameter-load-time repack (would be cached in a real model).
    wx_bd = _block_diag_gate_major(wx.astype(jnp.float32))   # [G*I, 4*G*H]
    wh_bd = _block_diag_gate_major(wh.astype(jnp.float32))   # [G*H, 4*G*H]

    # Free contiguous reshapes only (no transposes, no per-step concat/cast).
    xs_flat = xs.reshape(T, B, GI).astype(jnp.float32)
    h0_flat = h0.reshape(B, GH).astype(jnp.float32)
    c0_flat = c0.reshape(B, GH).astype(jnp.float32)

    flops = T * 2 * B * (GI + GH) * 4 * GH
    transcendentals = T * B * 5 * GH               # 3*sigmoid + 2*tanh per element
    bytes_accessed = 4 * (xs_flat.size + h0_flat.size + c0_flat.size
                          + wx_bd.size + wh_bd.size + T * B * GH + B * GH)

    h_seq, c_last = pl.pallas_call(
        _group_lstm_seq_kernel,
        out_shape=(
            jax.ShapeDtypeStruct((T, B, GH), jnp.float32),
            jax.ShapeDtypeStruct((B, GH), jnp.float32),
        ),
        grid_spec=pltpu.PrefetchScalarGridSpec(
            num_scalar_prefetch=0,
            grid=(T,),
            in_specs=[
                pl.BlockSpec((1, B, GI), lambda t: (t, 0, 0)),     # x_t streamed per step
                pl.BlockSpec((B, GH), lambda t: (0, 0)),           # h0 (read at t==0)
                pl.BlockSpec((B, GH), lambda t: (0, 0)),           # c0 (read at t==0)
                pl.BlockSpec((GI, 4 * GH), lambda t: (0, 0)),      # Wx_bd, VMEM-resident
                pl.BlockSpec((GH, 4 * GH), lambda t: (0, 0)),      # Wh_bd, VMEM-resident
            ],
            out_specs=[
                pl.BlockSpec((1, B, GH), lambda t: (t, 0, 0)),     # h_t per step
                pl.BlockSpec((B, GH), lambda t: (0, 0)),           # final c (accumulator-style)
            ],
            scratch_shapes=[
                pltpu.VMEM((B, GH), jnp.float32),   # h carry
                pltpu.VMEM((B, GH), jnp.float32),   # c carry
            ],
        ),
        compiler_params=pltpu.CompilerParams(
            dimension_semantics=("arbitrary",),     # time axis is a recurrence
        ),
        cost_estimate=pl.CostEstimate(
            flops=flops,
            transcendentals=transcendentals,
            bytes_accessed=bytes_accessed,
        ),
    )(xs_flat, h0_flat, c0_flat, wx_bd, wh_bd)

    return h_seq.reshape(T, B, G, H), c_last.reshape(B, G, H)


def group_lstm_cell(x, hs, cs, wx, wh):
    """Single GroupLSTMCell forward step (the PyTorch module's forward)."""
    h_seq, c_last = group_lstm_scan(x[None], hs, cs, wx, wh)
    return h_seq[0], c_last


def _reference_cell(x, hs, cs, wx, wh):
    H = hs.shape[-1]
    hp = jax.lax.Precision.HIGHEST
    ih = jnp.einsum('bgi,gio->bgo', x, wx, precision=hp)
    hh = jnp.einsum('bgh,gho->bgo', hs, wh, precision=hp)
    preact = ih + hh
    gates = jax.nn.sigmoid(preact[..., :3 * H])
    cand = jnp.tanh(preact[..., 3 * H:])
    i_g = gates[..., :H]
    f_g = gates[..., H:2 * H]
    o_g = gates[..., 2 * H:3 * H]
    c_next = cs * f_g + i_g * cand
    h_next = o_g * jnp.tanh(c_next)
    return h_next, c_next


if __name__ == "__main__":
    B, G = 8, 4
    INPUT_SIZE, HIDDEN_SIZE = 32, 32
    T = 6

    key = jax.random.PRNGKey(0)
    kx, kh, kc, kwx, kwh, kxs = jax.random.split(key, 6)

    x = jax.random.normal(kx, (B, G, INPUT_SIZE), dtype=jnp.float32)
    hs = jax.random.normal(kh, (B, G, HIDDEN_SIZE), dtype=jnp.float32)
    cs = jax.random.normal(kc, (B, G, HIDDEN_SIZE), dtype=jnp.float32)
    xs = jax.random.normal(kxs, (T, B, G, INPUT_SIZE), dtype=jnp.float32)

    # reset_parameters(): uniform(-stdv, stdv), stdv = 1/sqrt(hidden_size).
    # TODO(synk): GroupLinear in the reference codebase has no bias; weights only here.
    stdv = 1.0 / math.sqrt(HIDDEN_SIZE)
    wx = jax.random.uniform(kwx, (G, INPUT_SIZE, 4 * HIDDEN_SIZE),
                            minval=-stdv, maxval=stdv, dtype=jnp.float32)
    wh = jax.random.uniform(kwh, (G, HIDDEN_SIZE, 4 * HIDDEN_SIZE),
                            minval=-stdv, maxval=stdv, dtype=jnp.float32)

    # ---- Single-step (the module's forward) ----
    h_next, c_next = jax.jit(group_lstm_cell)(x, hs, cs, wx, wh)
    jax.block_until_ready((h_next, c_next))

    h_ref, c_ref = _reference_cell(x, hs, cs, wx, wh)
    assert jnp.allclose(h_next, h_ref, atol=5e-3, rtol=5e-3), \
        float(jnp.max(jnp.abs(h_next - h_ref)))
    assert jnp.allclose(c_next, c_ref, atol=5e-3, rtol=5e-3), \
        float(jnp.max(jnp.abs(c_next - c_ref)))

    # ---- T-step recurrence fused into one pallas_call ----
    h_seq, c_last = jax.jit(group_lstm_scan)(xs, hs, cs, wx, wh)
    jax.block_until_ready((h_seq, c_last))

    def ref_step(carry, xt):
        h, c = carry
        h2, c2 = _reference_cell(xt, h, c, wx, wh)
        return (h2, c2), h2

    (h_ref_T, c_ref_T), h_seq_ref = jax.lax.scan(ref_step, (hs, cs), xs)
    assert jnp.allclose(h_seq, h_seq_ref, atol=1e-2, rtol=1e-2), \
        float(jnp.max(jnp.abs(h_seq - h_seq_ref)))
    assert jnp.allclose(c_last, c_ref_T, atol=1e-2, rtol=1e-2), \
        float(jnp.max(jnp.abs(c_last - c_ref_T)))

    print("KERNEL_OK")
</pallas_src>

<mosaic_0001>
module attributes {stable_mosaic.version = 11 : i64} {
  func.func @_group_lstm_seq_kernel(%arg0: i32, %arg1: memref<1x8x128xf32, #tpu.memory_space<vmem>>, %arg2: memref<8x128xf32, #tpu.memory_space<vmem>>, %arg3: memref<8x128xf32, #tpu.memory_space<vmem>>, %arg4: memref<128x512xf32, #tpu.memory_space<vmem>>, %arg5: memref<128x512xf32, #tpu.memory_space<vmem>>, %arg6: memref<1x8x128xf32, #tpu.memory_space<vmem>>, %arg7: memref<8x128xf32, #tpu.memory_space<vmem>>, %arg8: memref<8x128xf32, #tpu.memory_space<vmem>>, %arg9: memref<8x128xf32, #tpu.memory_space<vmem>>) attributes {dimension_semantics = [#tpu.dimension_semantics<arbitrary>], iteration_bounds = array<i64: 1>, scalar_prefetch = 0 : i64, scratch_operands = 2 : i64, tpu.core_type = #tpu.core_type<tc>, window_params = [{transform_indices = @transform_0, window_bounds = array<i64: 1, 8, 128>}, {pipeline_mode = #tpu.pipeline_mode<synchronous>, transform_indices = @transform_1, window_bounds = array<i64: 8, 128>}, {pipeline_mode = #tpu.pipeline_mode<synchronous>, transform_indices = @transform_2, window_bounds = array<i64: 8, 128>}, {pipeline_mode = #tpu.pipeline_mode<synchronous>, transform_indices = @transform_3, window_bounds = array<i64: 128, 512>}, {pipeline_mode = #tpu.pipeline_mode<synchronous>, transform_indices = @transform_4, window_bounds = array<i64: 128, 512>}, {transform_indices = @transform_5, window_bounds = array<i64: 1, 8, 128>}, {pipeline_mode = #tpu.pipeline_mode<synchronous>, transform_indices = @transform_6, window_bounds = array<i64: 8, 128>}]} {
    %c0_i32 = arith.constant 0 : i32
    %0 = arith.cmpi eq, %arg0, %c0_i32 : i32
    %1 = arith.extui %0 : i1 to i32
    %c0_i32_0 = arith.constant 0 : i32
    %2 = arith.cmpi ne, %1, %c0_i32_0 : i32
    scf.if %2 {
      %c0_24 = arith.constant 0 : index
      %c0_25 = arith.constant 0 : index
      %43 = vector.load %arg2[%c0_24, %c0_25] : memref<8x128xf32, #tpu.memory_space<vmem>>, vector<8x128xf32>
      %c0_26 = arith.constant 0 : index
      %c0_27 = arith.constant 0 : index
      %44 = vector.load %arg8[%c0_26, %c0_27] : memref<8x128xf32, #tpu.memory_space<vmem>>, vector<8x128xf32>
      tpu.vector_store %arg8[%c0_26, %c0_27], %43 {strides = array<i32>} : memref<8x128xf32, #tpu.memory_space<vmem>>, vector<8x128xf32>,
      %c0_28 = arith.constant 0 : index
      %c0_29 = arith.constant 0 : index
      %45 = vector.load %arg3[%c0_28, %c0_29] : memref<8x128xf32, #tpu.memory_space<vmem>>, vector<8x128xf32>
      %c0_30 = arith.constant 0 : index
      %c0_31 = arith.constant 0 : index
      %46 = vector.load %arg9[%c0_30, %c0_31] : memref<8x128xf32, #tpu.memory_space<vmem>>, vector<8x128xf32>
      tpu.vector_store %arg9[%c0_30, %c0_31], %45 {strides = array<i32>} : memref<8x128xf32, #tpu.memory_space<vmem>>, vector<8x128xf32>,
    } else {
    }
    %c0 = arith.constant 0 : index
    %c0_1 = arith.constant 0 : index
    %c0_2 = arith.constant 0 : index
    %3 = vector.load %arg1[%c0, %c0_1, %c0_2] : memref<1x8x128xf32, #tpu.memory_space<vmem>>, vector<1x8x128xf32>
    %4 = vector.shape_cast %3 : vector<1x8x128xf32> to vector<8x128xf32>
    %c0_3 = arith.constant 0 : index
    %c0_4 = arith.constant 0 : index
    %5 = vector.load %arg4[%c0_3, %c0_4] : memref<128x512xf32, #tpu.memory_space<vmem>>, vector<128x512xf32>
    %cst = arith.constant dense<0.000000e+00> : vector<8x512xf32>
    %6 = tpu.matmul %4, %5, %cst {dimension_numbers = #tpu.dot_dimension_numbers<[1], [0], [0], [1], [0, 0, 1, 1], [], []>} : vector<8x128xf32>, vector<128x512xf32>, vector<8x512xf32> -> vector<8x512xf32>
    %c0_5 = arith.constant 0 : index
    %c0_6 = arith.constant 0 : index
    %7 = vector.load %arg8[%c0_5, %c0_6] : memref<8x128xf32, #tpu.memory_space<vmem>>, vector<8x128xf32>
    %c0_7 = arith.constant 0 : index
    %c0_8 = arith.constant 0 : index
    %8 = vector.load %arg5[%c0_7, %c0_8] : memref<128x512xf32, #tpu.memory_space<vmem>>, vector<128x512xf32>
    %cst_9 = arith.constant dense<0.000000e+00> : vector<8x512xf32>
    %9 = tpu.matmul %7, %8, %cst_9 {dimension_numbers = #tpu.dot_dimension_numbers<[1], [0], [0], [1], [0, 0, 1, 1], [], []>} : vector<8x128xf32>, vector<128x512xf32>, vector<8x512xf32> -> vector<8x512xf32>
    %10 = arith.addf %6, %9 : vector<8x512xf32>
    %11 = vector.extract_strided_slice %10 {offsets = [0, 0], sizes = [8, 128], strides = [1, 1]} : vector<8x512xf32> to vector<8x128xf32>
    %12 = arith.negf %11 : vector<8x128xf32>
    %13 = math.exp %12 : vector<8x128xf32>
    %cst_10 = arith.constant 1.000000e+00 : f32
    %14 = vector.broadcast %cst_10 : f32 to vector<8x128xf32>
    %15 = arith.addf %14, %13 : vector<8x128xf32>
    %16 = arith.divf %14, %15 : vector<8x128xf32>
    %17 = vector.extract_strided_slice %10 {offsets = [0, 128], sizes = [8, 128], strides = [1, 1]} : vector<8x512xf32> to vector<8x128xf32>
    %18 = arith.negf %17 : vector<8x128xf32>
    %19 = math.exp %18 : vector<8x128xf32>
    %cst_11 = arith.constant 1.000000e+00 : f32
    %20 = vector.broadcast %cst_11 : f32 to vector<8x128xf32>
    %21 = arith.addf %20, %19 : vector<8x128xf32>
    %22 = arith.divf %20, %21 : vector<8x128xf32>
    %23 = vector.extract_strided_slice %10 {offsets = [0, 256], sizes = [8, 128], strides = [1, 1]} : vector<8x512xf32> to vector<8x128xf32>
    %24 = arith.negf %23 : vector<8x128xf32>
    %25 = math.exp %24 : vector<8x128xf32>
    %cst_12 = arith.constant 1.000000e+00 : f32
    %26 = vector.broadcast %cst_12 : f32 to vector<8x128xf32>
    %27 = arith.addf %26, %25 : vector<8x128xf32>
    %28 = arith.divf %26, %27 : vector<8x128xf32>
    %29 = vector.extract_strided_slice %10 {offsets = [0, 384], sizes = [8, 128], strides = [1, 1]} : vector<8x512xf32> to vector<8x128xf32>
    %30 = math.tanh %29 : vector<8x128xf32>
    %c0_13 = arith.constant 0 : index
    %c0_14 = arith.constant 0 : index
    %31 = vector.load %arg9[%c0_13, %c0_14] : memref<8x128xf32, #tpu.memory_space<vmem>>, vector<8x128xf32>
    %32 = arith.mulf %31, %22 : vector<8x128xf32>
    %33 = arith.mulf %16, %30 : vector<8x128xf32>
    %34 = arith.addf %32, %33 : vector<8x128xf32>
    %35 = math.tanh %34 : vector<8x128xf32>
    %36 = arith.mulf %28, %35 : vector<8x128xf32>
    %c0_15 = arith.constant 0 : index
    %c0_16 = arith.constant 0 : index
    %37 = vector.load %arg9[%c0_15, %c0_16] : memref<8x128xf32, #tpu.memory_space<vmem>>, vector<8x128xf32>
    tpu.vector_store %arg9[%c0_15, %c0_16], %34 {strides = array<i32>} : memref<8x128xf32, #tpu.memory_space<vmem>>, vector<8x128xf32>,
    %c0_17 = arith.constant 0 : index
    %c0_18 = arith.constant 0 : index
    %38 = vector.load %arg8[%c0_17, %c0_18] : memref<8x128xf32, #tpu.memory_space<vmem>>, vector<8x128xf32>
    tpu.vector_store %arg8[%c0_17, %c0_18], %36 {strides = array<i32>} : memref<8x128xf32, #tpu.memory_space<vmem>>, vector<8x128xf32>,
    %c0_19 = arith.constant 0 : index
    %c0_20 = arith.constant 0 : index
    %c0_21 = arith.constant 0 : index
    %39 = vector.load %arg6[%c0_19, %c0_20, %c0_21] : memref<1x8x128xf32, #tpu.memory_space<vmem>>, vector<1x8x128xf32>
    %40 = vector.shape_cast %39 : vector<1x8x128xf32> to vector<8x128xf32>
    %41 = vector.shape_cast %36 : vector<8x128xf32> to vector<1x8x128xf32>
    tpu.vector_store %arg6[%c0_19, %c0_20, %c0_21], %41 {strides = array<i32>} : memref<1x8x128xf32, #tpu.memory_space<vmem>>, vector<1x8x128xf32>,
    %c0_22 = arith.constant 0 : index
    %c0_23 = arith.constant 0 : index
    %42 = vector.load %arg7[%c0_22, %c0_23] : memref<8x128xf32, #tpu.memory_space<vmem>>, vector<8x128xf32>
    tpu.vector_store %arg7[%c0_22, %c0_23], %34 {strides = array<i32>} : memref<8x128xf32, #tpu.memory_space<vmem>>, vector<8x128xf32>,
    return
  }
  func.func @transform_0(%arg0: i32) -> (i32, i32, i32) {
    %c0_i32 = arith.constant 0 : i32
    %c0_i32_0 = arith.constant 0 : i32
    %c0_i32_1 = arith.constant 0 : i32
    return %arg0, %c0_i32, %c0_i32_0 : i32, i32, i32
  }
  func.func @transform_1(%arg0: i32) -> (i32, i32) {
    %c0_i32 = arith.constant 0 : i32
    %c0_i32_0 = arith.constant 0 : i32
    %c0_i32_1 = arith.constant 0 : i32
    return %c0_i32, %c0_i32_0 : i32, i32
  }
  func.func @transform_2(%arg0: i32) -> (i32, i32) {
    %c0_i32 = arith.constant 0 : i32
    %c0_i32_0 = arith.constant 0 : i32
    %c0_i32_1 = arith.constant 0 : i32
    return %c0_i32, %c0_i32_0 : i32, i32
  }
  func.func @transform_3(%arg0: i32) -> (i32, i32) {
    %c0_i32 = arith.constant 0 : i32
    %c0_i32_0 = arith.constant 0 : i32
    %c0_i32_1 = arith.constant 0 : i32
    return %c0_i32, %c0_i32_0 : i32, i32
  }
  func.func @transform_4(%arg0: i32) -> (i32, i32) {
    %c0_i32 = arith.constant 0 : i32
    %c0_i32_0 = arith.constant 0 : i32
    %c0_i32_1 = arith.constant 0 : i32
    return %c0_i32, %c0_i32_0 : i32, i32
  }
  func.func @transform_5(%arg0: i32) -> (i32, i32, i32) {
    %c0_i32 = arith.constant 0 : i32
    %c0_i32_0 = arith.constant 0 : i32
    %c0_i32_1 = arith.constant 0 : i32
    return %arg0, %c0_i32, %c0_i32_0 : i32, i32, i32
  }
  func.func @transform_6(%arg0: i32) -> (i32, i32) {
    %c0_i32 = arith.constant 0 : i32
    %c0_i32_0 = arith.constant 0 : i32
    %c0_i32_1 = arith.constant 0 : i32
    return %c0_i32, %c0_i32_0 : i32, i32
  }
}

</mosaic_0001>

<bundles_post_ra>
// kernel: group_lstm_cell.1
= control target key start
LH: loop header
LB: loop body
LE: loop exit
PB: predicated region body
PF: predicated region fallthrough
CT: control target
= control target key end

     0   :  { %v633_v3 = vmov 0.0   ;;  %s1072_s4 = inlined_call_operand.vmem [shape: f32[128,512], index: 4, kind: input, shape index: {}]   ;;  %s1073_s3 = inlined_call_operand.vmem [shape: f32[128,512], index: 3, kind: input, shape index: {}]   ;;  %s1074_s1 = inlined_call_operand.vmem [shape: f32[8,128], index: 1, kind: input, shape index: {}]   ;;  %s1075_s0 = inlined_call_operand.vmem [shape: f32[1,8,128], index: 0, kind: input, shape index: {}]   ;;  %s1076_s2 = inlined_call_operand.vmem [shape: f32[8,128], index: 2, kind: input, shape index: {}]   ;;  %s1077_s6 = inlined_call_operand.vmem [shape: f32[8,128], index: 6, kind: output, shape index: {1}]   ;;  %s1078_s5 = inlined_call_operand.vmem [shape: f32[1,8,128], index: 5, kind: output, shape index: {0}]  }
   0x1   :  { %v97_v0 = vld [vmem:[%s1072_s4 + $0x8] sm:$0xff]  ;;  %v99_v2 = vld [vmem:[%s1072_s4 + $0x18] sm:$0xff]  ;;  %224 = vmatprep.mubr.f32.mxu0 %v633_v3  ;;  %295 = vmatprep.mubr.f32.mxu1 %v633_v3  ;;  %v96_v6 = vld [vmem:[%s1072_s4] sm:$0xff] }
   0x2   :  { %v101_v1 = vld [vmem:[%s1072_s4 + $0x28] sm:$0xff]  ;;  %v103_v5 = vld [vmem:[%s1072_s4 + $0x38] sm:$0xff]  ;;  %v100_v7 = vld [vmem:[%s1072_s4 + $0x20] sm:$0xff] }
   0x3   :  { %v484_v4 = vpack.c.bf16 %v101_v1, %v97_v0  ;;  %v516_v8 = vpack.c.bf16 %v103_v5, %v99_v2  ;;  %v486_v9 = vpack.c.bf16 %v100_v7, %v96_v6  ;;  %v98_v10 = vld [vmem:[%s1072_s4 + $0x10] sm:$0xff]  ;;  %v105_v12 = vld [vmem:[%s1072_s4 + $0x48] sm:$0xff]  ;;  %v107_v15 = vld [vmem:[%s1072_s4 + $0x58] sm:$0xff] }
   0x4   :  { %v102_v11 = vld [vmem:[%s1072_s4 + $0x30] sm:$0xff]  ;;  %v109_v14 = vld [vmem:[%s1072_s4 + $0x68] sm:$0xff]  ;;  %v111_v16 = vld [vmem:[%s1072_s4 + $0x78] sm:$0xff] }
   0x5   :  { %485 = vmatprep.subr.bf16.mxu0 %v484_v4  ;;  %v518_v13 = vpack.c.bf16 %v102_v11, %v98_v10  ;;  %517 = vmatprep.subr.bf16.mxu1 %v516_v8  ;;  %v488_v17 = vpack.c.bf16 %v109_v14, %v105_v12  ;;  %v520_v18 = vpack.c.bf16 %v111_v16, %v107_v15  ;;  %v104_v19 = vld [vmem:[%s1072_s4 + $0x40] sm:$0xff]  ;;  %v106_v21 = vld [vmem:[%s1072_s4 + $0x50] sm:$0xff]  ;;  %v113_v24 = vld [vmem:[%s1072_s4 + $0x88] sm:$0xff] }
   0x6   :  { %487 = vmatpush1.bf16.msra.mxu0 %v486_v9  ;;  %v108_v20 = vld [vmem:[%s1072_s4 + $0x60] sm:$0xff]  ;;  %v110_v23 = vld [vmem:[%s1072_s4 + $0x70] sm:$0xff]  ;;  %v117_v25 = vld [vmem:[%s1072_s4 + $0xa8] sm:$0xff] }
   0x7   :  { %519 = vmatpush1.bf16.msra.mxu1 %v518_v13  ;;  %v490_v22 = vpack.c.bf16 %v108_v20, %v104_v19  ;;  %489 = vmatprep.subr.bf16.mxu0 %v488_v17  ;;  %v522_v26 = vpack.c.bf16 %v110_v23, %v106_v21  ;;  %v492_v27 = vpack.c.bf16 %v117_v25, %v113_v24  ;;  %v115_v28 = vld [vmem:[%s1072_s4 + $0x98] sm:$0xff]  ;;  %v112_v30 = vld [vmem:[%s1072_s4 + $0x80] sm:$0xff]  ;;  %v114_v33 = vld [vmem:[%s1072_s4 + $0x90] sm:$0xff] }
   0x8   :  { %521 = vmatprep.subr.bf16.mxu1 %v520_v18  ;;  %v119_v29 = vld [vmem:[%s1072_s4 + $0xb8] sm:$0xff]  ;;  %v116_v32 = vld [vmem:[%s1072_s4 + $0xa0] sm:$0xff]  ;;  %v118_v34 = vld [vmem:[%s1072_s4 + $0xb0] sm:$0xff] }
   0x9   :  { %v524_v31 = vpack.c.bf16 %v119_v29, %v115_v28  ;;  %v494_v35 = vpack.c.bf16 %v116_v32, %v112_v30  ;;  %v121_v36 = vld [vmem:[%s1072_s4 + $0xc8] sm:$0xff]  ;;  %v123_v38 = vld [vmem:[%s1072_s4 + $0xd8] sm:$0xff]  ;;  %v526_v39 = vpack.c.bf16 %v118_v34, %v114_v33  ;;  %v120_v42 = vld [vmem:[%s1072_s4 + $0xc0] sm:$0xff] }
   0xa   :  { %491 = vmatpush1.bf16.msra.mxu0 %v490_v22  ;;  %v125_v37 = vld [vmem:[%s1072_s4 + $0xe8] sm:$0xff]  ;;  %v127_v41 = vld [vmem:[%s1072_s4 + $0xf8] sm:$0xff]  ;;  %v124_v43 = vld [vmem:[%s1072_s4 + $0xe0] sm:$0xff] }
   0xb   :  { %523 = vmatpush1.bf16.msra.mxu1 %v522_v26  ;;  %493 = vmatprep.subr.bf16.mxu0 %v492_v27  ;;  %v496_v40 = vpack.c.bf16 %v125_v37, %v121_v36  ;;  %v528_v44 = vpack.c.bf16 %v127_v41, %v123_v38  ;;  %v122_v45 = vld [vmem:[%s1072_s4 + $0xd0] sm:$0xff]  ;;  %v129_v47 = vld [vmem:[%s1072_s4 + $0x108] sm:$0xff]  ;;  %v131_v49 = vld [vmem:[%s1072_s4 + $0x118] sm:$0xff]  ;;  %v498_v51 = vpack.c.bf16 %v124_v43, %v120_v42 }
   0xc   :  { %525 = vmatprep.subr.bf16.mxu1 %v524_v31  ;;  %v126_v46 = vld [vmem:[%s1072_s4 + $0xf0] sm:$0xff]  ;;  %v133_v48 = vld [vmem:[%s1072_s4 + $0x128] sm:$0xff]  ;;  %v135_v50 = vld [vmem:[%s1072_s4 + $0x138] sm:$0xff] }
   0xd   :  { %v530_v52 = vpack.c.bf16 %v126_v46, %v122_v45  ;;  %v500_v53 = vpack.c.bf16 %v133_v48, %v129_v47  ;;  %v128_v54 = vld [vmem:[%s1072_s4 + $0x100] sm:$0xff]  ;;  %v130_v56 = vld [vmem:[%s1072_s4 + $0x110] sm:$0xff]  ;;  %v532_v57 = vpack.c.bf16 %v135_v50, %v131_v49  ;;  %v137_v59 = vld [vmem:[%s1072_s4 + $0x148] sm:$0xff] }
   0xe   :  { %495 = vmatpush1.bf16.msra.mxu0 %v494_v35  ;;  %v132_v55 = vld [vmem:[%s1072_s4 + $0x120] sm:$0xff]  ;;  %v134_v58 = vld [vmem:[%s1072_s4 + $0x130] sm:$0xff]  ;;  %v141_v60 = vld [vmem:[%s1072_s4 + $0x168] sm:$0xff] }
   0xf   :  { %527 = vmatpush1.bf16.msra.mxu1 %v526_v39  ;;  %497 = vmatprep.subr.bf16.mxu0 %v496_v40  ;;  %v139_v61 = vld [vmem:[%s1072_s4 + $0x158] sm:$0xff]  ;;  %v502_v63 = vpack.c.bf16 %v132_v55, %v128_v54  ;;  %v534_v0 = vpack.c.bf16 %v134_v58, %v130_v56  ;;  %v504_v1 = vpack.c.bf16 %v141_v60, %v137_v59  ;;  %v136_v2 = vld [vmem:[%s1072_s4 + $0x140] sm:$0xff]  ;;  %v138_v5 = vld [vmem:[%s1072_s4 + $0x150] sm:$0xff] }
  0x10   :  { %529 = vmatprep.subr.bf16.mxu1 %v528_v44  ;;  %v143_v62 = vld [vmem:[%s1072_s4 + $0x178] sm:$0xff]  ;;  %v140_v4 = vld [vmem:[%s1072_s4 + $0x160] sm:$0xff]  ;;  %v142_v7 = vld [vmem:[%s1072_s4 + $0x170] sm:$0xff] }
  0x11   :  { %v536_v6 = vpack.c.bf16 %v143_v62, %v139_v61  ;;  %v145_v8 = vld [vmem:[%s1072_s4 + $0x188] sm:$0xff]  ;;  %v147_v10 = vld [vmem:[%s1072_s4 + $0x198] sm:$0xff]  ;;  %v506_v12 = vpack.c.bf16 %v140_v4, %v136_v2  ;;  %v538_v13 = vpack.c.bf16 %v142_v7, %v138_v5  ;;  %v144_v15 = vld [vmem:[%s1072_s4 + $0x180] sm:$0xff] }
  0x12   :  { %499 = vmatpush1.bf16.msra.mxu0 %v498_v51  ;;  %v149_v9 = vld [vmem:[%s1072_s4 + $0x1a8] sm:$0xff]  ;;  %v151_v11 = vld [vmem:[%s1072_s4 + $0x1b8] sm:$0xff]  ;;  %v148_v16 = vld [vmem:[%s1072_s4 + $0x1a0] sm:$0xff] }
  0x13   :  { %531 = vmatpush1.bf16.msra.mxu1 %v530_v52  ;;  %501 = vmatprep.subr.bf16.mxu0 %v500_v53  ;;  %v508_v14 = vpack.c.bf16 %v149_v9, %v145_v8  ;;  %v146_v17 = vld [vmem:[%s1072_s4 + $0x190] sm:$0xff]  ;;  %v540_v18 = vpack.c.bf16 %v151_v11, %v147_v10  ;;  %v153_v20 = vld [vmem:[%s1072_s4 + $0x1c8] sm:$0xff]  ;;  %v155_v22 = vld [vmem:[%s1072_s4 + $0x1d8] sm:$0xff]  ;;  %v510_v24 = vpack.c.bf16 %v148_v16, %v144_v15 }
  0x14   :  { %533 = vmatprep.subr.bf16.mxu1 %v532_v57  ;;  %v150_v19 = vld [vmem:[%s1072_s4 + $0x1b0] sm:$0xff]  ;;  %v157_v21 = vld [vmem:[%s1072_s4 + $0x1e8] sm:$0xff]  ;;  %v159_v23 = vld [vmem:[%s1072_s4 + $0x1f8] sm:$0xff] }
  0x15   :  { %v542_v25 = vpack.c.bf16 %v150_v19, %v146_v17  ;;  %v512_v26 = vpack.c.bf16 %v157_v21, %v153_v20  ;;  %v152_v27 = vld [vmem:[%s1072_s4 + $0x1c0] sm:$0xff]  ;;  %v154_v29 = vld [vmem:[%s1072_s4 + $0x1d0] sm:$0xff]  ;;  %v544_v30 = vpack.c.bf16 %v159_v23, %v155_v22  ;;  %v32_v32 = vld [vmem:[%s1073_s3 + $0x8] sm:$0xff] }
  0x16   :  { %503 = vmatpush1.bf16.msra.mxu0 %v502_v63  ;;  %v156_v28 = vld [vmem:[%s1072_s4 + $0x1e0] sm:$0xff]  ;;  %v158_v31 = vld [vmem:[%s1072_s4 + $0x1f0] sm:$0xff]  ;;  %v36_v33 = vld [vmem:[%s1073_s3 + $0x28] sm:$0xff] }
  0x17   :  { %535 = vmatpush1.bf16.msra.mxu1 %v534_v0  ;;  %505 = vmatprep.subr.bf16.mxu0 %v504_v1  ;;  %v34_v34 = vld [vmem:[%s1073_s3 + $0x18] sm:$0xff]  ;;  %v514_v36 = vpack.c.bf16 %v156_v28, %v152_v27  ;;  %v546_v37 = vpack.c.bf16 %v158_v31, %v154_v29  ;;  %v548_v38 = vpack.c.bf16 %v36_v33, %v32_v32  ;;  %v31_v39 = vld [vmem:[%s1073_s3] sm:$0xff]  ;;  %v33_v41 = vld [vmem:[%s1073_s3 + $0x10] sm:$0xff] }
  0x18   :  { %537 = vmatprep.subr.bf16.mxu1 %v536_v6  ;;  %v38_v35 = vld [vmem:[%s1073_s3 + $0x38] sm:$0xff]  ;;  %v35_v40 = vld [vmem:[%s1073_s3 + $0x20] sm:$0xff]  ;;  %v37_v43 = vld [vmem:[%s1073_s3 + $0x30] sm:$0xff] }
  0x19   :  { %v580_v42 = vpack.c.bf16 %v38_v35, %v34_v34  ;;  %v40_v44 = vld [vmem:[%s1073_s3 + $0x48] sm:$0xff]  ;;  %v42_v46 = vld [vmem:[%s1073_s3 + $0x58] sm:$0xff]  ;;  %v26_v48 = vld [vmem:[%s1074_s1] sm:$0xff]  ;;  %v550_v49 = vpack.c.bf16 %v35_v40, %v31_v39  ;;  %v582_v50 = vpack.c.bf16 %v37_v43, %v33_v41 }
  0x1a   :  { %507 = vmatpush1.bf16.msra.mxu0 %v506_v12  ;;  %v44_v45 = vld [vmem:[%s1073_s3 + $0x68] sm:$0xff]  ;;  %v46_v47 = vld [vmem:[%s1073_s3 + $0x78] sm:$0xff]  ;;  %v39_v52 = vld [vmem:[%s1073_s3 + $0x40] sm:$0xff] }
  0x1b   :  { %539 = vmatpush1.bf16.msra.mxu1 %v538_v13  ;;  %509 = vmatprep.subr.bf16.mxu0 %v508_v14  ;;  %v552_v51 = vpack.c.bf16 %v44_v45, %v40_v44  ;;  %v43_v53 = vld [vmem:[%s1073_s3 + $0x60] sm:$0xff]  ;;  %v41_v54 = vld [vmem:[%s1073_s3 + $0x50] sm:$0xff]  ;;  %v584_v55 = vpack.c.bf16 %v46_v47, %v42_v46  ;;  %v48_v57 = vld [vmem:[%s1073_s3 + $0x88] sm:$0xff] }
  0x1c   :  { %541 = vmatprep.subr.bf16.mxu1 %v540_v18  ;;  %v45_v56 = vld [vmem:[%s1073_s3 + $0x70] sm:$0xff]  ;;  %v52_v58 = vld [vmem:[%s1073_s3 + $0xa8] sm:$0xff]  ;;  %v50_v59 = vld [vmem:[%s1073_s3 + $0x98] sm:$0xff]  ;;  %v554_v61 = vpack.c.bf16 %v43_v53, %v39_v52 }
  0x1d   :  { %v54_v60 = vld [vmem:[%s1073_s3 + $0xb8] sm:$0xff]  ;;  %v586_v62 = vpack.c.bf16 %v45_v56, %v41_v54  ;;  %v556_v63 = vpack.c.bf16 %v52_v58, %v48_v57  ;;  %v47_v0 = vld [vmem:[%s1073_s3 + $0x80] sm:$0xff]  ;;  %v49_v2 = vld [vmem:[%s1073_s3 + $0x90] sm:$0xff] }
  0x1e   :  { %511 = vmatpush1.bf16.msra.mxu0 %v510_v24  ;;  %v51_v1 = vld [vmem:[%s1073_s3 + $0xa0] sm:$0xff]  ;;  %v588_v4 = vpack.c.bf16 %v54_v60, %v50_v59  ;;  %v53_v5 = vld [vmem:[%s1073_s3 + $0xb0] sm:$0xff]  ;;  %v56_v6 = vld [vmem:[%s1073_s3 + $0xc8] sm:$0xff] }
  0x1f   :  { %543 = vmatpush1.bf16.msra.mxu1 %v542_v25  ;;  %513 = vmatprep.subr.bf16.mxu0 %v512_v26  ;;  %v60_v7 = vld [vmem:[%s1073_s3 + $0xe8] sm:$0xff]  ;;  %v58_v8 = vld [vmem:[%s1073_s3 + $0xd8] sm:$0xff]  ;;  %v558_v10 = vpack.c.bf16 %v51_v1, %v47_v0  ;;  %v590_v11 = vpack.c.bf16 %v53_v5, %v49_v2  ;;  %v55_v13 = vld [vmem:[%s1073_s3 + $0xc0] sm:$0xff] }
  0x20   :  { %545 = vmatprep.subr.bf16.mxu1 %v544_v30  ;;  %v62_v9 = vld [vmem:[%s1073_s3 + $0xf8] sm:$0xff]  ;;  %v560_v12 = vpack.c.bf16 %v60_v7, %v56_v6  ;;  %v59_v14 = vld [vmem:[%s1073_s3 + $0xe0] sm:$0xff]  ;;  %v57_v15 = vld [vmem:[%s1073_s3 + $0xd0] sm:$0xff] }
  0x21   :  { %v61_v16 = vld [vmem:[%s1073_s3 + $0xf0] sm:$0xff]  ;;  %v64_v17 = vld [vmem:[%s1073_s3 + $0x108] sm:$0xff]  ;;  %v66_v19 = vld [vmem:[%s1073_s3 + $0x118] sm:$0xff]  ;;  %v562_v21 = vpack.c.bf16 %v59_v14, %v55_v13 }
  0x22   :  { %515 = vmatpush1.bf16.msra.mxu0 %v514_v36  ;;  %v68_v18 = vld [vmem:[%s1073_s3 + $0x128] sm:$0xff]  ;;  %v70_v20 = vld [vmem:[%s1073_s3 + $0x138] sm:$0xff]  ;;  %v594_v22 = vpack.c.bf16 %v61_v16, %v57_v15  ;;  %v63_v24 = vld [vmem:[%s1073_s3 + $0x100] sm:$0xff] }
  0x23   :  { %547 = vmatpush1.bf16.msra.mxu1 %v546_v37  ;;  %549 = vmatprep.subr.bf16.mxu0 %v548_v38  ;;  %v564_v23 = vpack.c.bf16 %v68_v18, %v64_v17  ;;  %v67_v25 = vld [vmem:[%s1073_s3 + $0x120] sm:$0xff]  ;;  %v65_v26 = vld [vmem:[%s1073_s3 + $0x110] sm:$0xff]  ;;  %v596_v27 = vpack.c.bf16 %v70_v20, %v66_v19  ;;  %v72_v29 = vld [vmem:[%s1073_s3 + $0x148] sm:$0xff] }
  0x24   :  { %581 = vmatprep.subr.bf16.mxu1 %v580_v42  ;;  %v69_v28 = vld [vmem:[%s1073_s3 + $0x130] sm:$0xff]  ;;  %v76_v30 = vld [vmem:[%s1073_s3 + $0x168] sm:$0xff]  ;;  %v74_v31 = vld [vmem:[%s1073_s3 + $0x158] sm:$0xff]  ;;  %v566_v33 = vpack.c.bf16 %v67_v25, %v63_v24 }
  0x25   :  { %225 = vmatmul.mubr.f32.vlgmr.msra.gmra.mrb[0].mxu0 %v26_v48  ;;  %v78_v32 = vld [vmem:[%s1073_s3 + $0x178] sm:$0xff]  ;;  %v598_v34 = vpack.c.bf16 %v69_v28, %v65_v26  ;;  %v568_v35 = vpack.c.bf16 %v76_v30, %v72_v29  ;;  %v71_v36 = vld [vmem:[%s1073_s3 + $0x140] sm:$0xff]  ;;  %v73_v38 = vld [vmem:[%s1073_s3 + $0x150] sm:$0xff] }
  0x26   :  { %296 = vmatmul.mubr.f32.vlgmr.msra.gmra.mrb[0].mxu1 %v26_v48  ;;  %551 = vmatpush1.bf16.msra.mxu0 %v550_v49  ;;  %v75_v37 = vld [vmem:[%s1073_s3 + $0x160] sm:$0xff]  ;;  %v600_v39 = vpack.c.bf16 %v78_v32, %v74_v31  ;;  %v77_v40 = vld [vmem:[%s1073_s3 + $0x170] sm:$0xff]  ;;  %v80_v41 = vld [vmem:[%s1073_s3 + $0x188] sm:$0xff] }
  0x27   :  { %583 = vmatpush1.bf16.msra.mxu1 %v582_v50  ;;  %553 = vmatprep.subr.bf16.mxu0 %v552_v51  ;;  %v84_v42 = vld [vmem:[%s1073_s3 + $0x1a8] sm:$0xff]  ;;  %v82_v43 = vld [vmem:[%s1073_s3 + $0x198] sm:$0xff]  ;;  %v570_v45 = vpack.c.bf16 %v75_v37, %v71_v36  ;;  %v602_v46 = vpack.c.bf16 %v77_v40, %v73_v38  ;;  %v79_v48 = vld [vmem:[%s1073_s3 + $0x180] sm:$0xff] }
  0x28   :  { %585 = vmatprep.subr.bf16.mxu1 %v584_v55  ;;  %366 = vmatprep.mubr.f32.mxu0 %v633_v3  ;;  %v86_v44 = vld [vmem:[%s1073_s3 + $0x1b8] sm:$0xff]  ;;  %v572_v47 = vpack.c.bf16 %v84_v42, %v80_v41  ;;  %v83_v49 = vld [vmem:[%s1073_s3 + $0x1a0] sm:$0xff]  ;;  %v81_v50 = vld [vmem:[%s1073_s3 + $0x190] sm:$0xff] }
  0x29   :  { %437 = vmatprep.mubr.f32.mxu1 %v633_v3  ;;  %v592_v3 = vpack.c.bf16 %v62_v9, %v58_v8  ;;  %v604_v51 = vpack.c.bf16 %v86_v44, %v82_v43  ;;  %v85_v52 = vld [vmem:[%s1073_s3 + $0x1b0] sm:$0xff]  ;;  %v88_v53 = vld [vmem:[%s1073_s3 + $0x1c8] sm:$0xff]  ;;  %v90_v55 = vld [vmem:[%s1073_s3 + $0x1d8] sm:$0xff]  ;;  %v574_v57 = vpack.c.bf16 %v83_v49, %v79_v48 }
  0x2a   :  { %555 = vmatpush1.bf16.msra.mxu0 %v554_v61  ;;  %v92_v54 = vld [vmem:[%s1073_s3 + $0x1e8] sm:$0xff]  ;;  %v94_v56 = vld [vmem:[%s1073_s3 + $0x1f8] sm:$0xff]  ;;  %v606_v58 = vpack.c.bf16 %v85_v52, %v81_v50  ;;  %v87_v60 = vld [vmem:[%s1073_s3 + $0x1c0] sm:$0xff] }
  0x2b   :  { %587 = vmatpush1.bf16.msra.mxu1 %v586_v62  ;;  %557 = vmatprep.subr.bf16.mxu0 %v556_v63  ;;  %v576_v59 = vpack.c.bf16 %v92_v54, %v88_v53  ;;  %v91_v61 = vld [vmem:[%s1073_s3 + $0x1e0] sm:$0xff]  ;;  %v608_v62 = vpack.c.bf16 %v94_v56, %v90_v55  ;;  %v89_v63 = vld [vmem:[%s1073_s3 + $0x1d0] sm:$0xff] }
  0x2c   :  { %589 = vmatprep.subr.bf16.mxu1 %v588_v4  ;;  %v93_v0 = vld [vmem:[%s1073_s3 + $0x1f0] sm:$0xff]  ;;  %v578_v1 = vpack.c.bf16 %v91_v61, %v87_v60  ;;  %v30_v4 = vld [vmem:[%s1075_s0] sm:$0xff] }
  0x2d   :  { %v610_v2 = vpack.c.bf16 %v93_v0, %v89_v63  ;;  %v28_v18 = vld [vmem:[%s1076_s2] sm:$0xff] }
  0x2e   :  { %559 = vmatpush1.bf16.msra.mxu0 %v558_v10 }
  0x2f   :  { %591 = vmatpush1.bf16.msra.mxu1 %v590_v11  ;;  %561 = vmatprep.subr.bf16.mxu0 %v560_v12 }
  0x30   :  { %593 = vmatprep.subr.bf16.mxu1 %v592_v3 }
  0x32   :  { %563 = vmatpush1.bf16.msra.mxu0 %v562_v21 }
  0x33   :  { %595 = vmatpush1.bf16.msra.mxu1 %v594_v22  ;;  %565 = vmatprep.subr.bf16.mxu0 %v564_v23 }
  0x34   :  { %597 = vmatprep.subr.bf16.mxu1 %v596_v27 }
  0x36   :  { %567 = vmatpush1.bf16.msra.mxu0 %v566_v33 }
  0x37   :  { %599 = vmatpush1.bf16.msra.mxu1 %v598_v34  ;;  %569 = vmatprep.subr.bf16.mxu0 %v568_v35 }
  0x38   :  { %601 = vmatprep.subr.bf16.mxu1 %v600_v39 }
  0x3a   :  { %571 = vmatpush1.bf16.msra.mxu0 %v570_v45 }
  0x3b   :  { %603 = vmatpush1.bf16.msra.mxu1 %v602_v46  ;;  %573 = vmatprep.subr.bf16.mxu0 %v572_v47 }
  0x3c   :  { %605 = vmatprep.subr.bf16.mxu1 %v604_v51 }
  0x3e   :  { %575 = vmatpush1.bf16.msra.mxu0 %v574_v57 }
  0x3f   :  { %607 = vmatpush1.bf16.msra.mxu1 %v606_v58  ;;  %577 = vmatprep.subr.bf16.mxu0 %v576_v59 }
  0x40   :  { %609 = vmatprep.subr.bf16.mxu1 %v608_v62 }
  0x42   :  { %579 = vmatpush1.bf16.msra.mxu0 %v578_v1 }
  0x43   :  { %611 = vmatpush1.bf16.msra.mxu1 %v610_v2 }
  0x45   :  { %367 = vmatmul.mubr.f32.vlgmr.msra.gmra.mrb[0].mxu0 %v30_v4 }
  0x46   :  { %438 = vmatmul.mubr.f32.vlgmr.msra.gmra.mrb[0].mxu1 %v30_v4 }
 0x118   :  { %v368_v5 = vpop.f32.mrb[0].mxu0 }
 0x119   :  { %v481_v6 = vmul.f32 -1.442695, %v368_v5  ;;  %v439_v7 = vpop.f32.mrb[0].mxu1  ;;  %v370_v8 = vpop.f32.mrb[1].mxu0 }
 0x11a   :  { %v482_v9 = vmul.f32 -1.442695, %v370_v8  ;;  %v441_v10 = vpop.f32.mrb[1].mxu1  ;;  %v483_v11 = vmul.f32 -1.442695, %v439_v7 }
 0x11b   :  { %617 = vpow2.f32 %v481_v6 }
 0x11c   :  { %619 = vpow2.f32 %v482_v9 }
 0x11d   :  { %621 = vpow2.f32 %v483_v11 }
 0x11e   :  { %623 = vtanh.f32 %v441_v10 }
 0x125   :  { %v618_v12 = vpop.eup %617 }
 0x126   :  { %v447_v13 = vadd.f32 1.0, %v618_v12  ;;  %v620_v14 = vpop.eup %619 }
 0x127   :  { %v453_v15 = vadd.f32 1.0, %v620_v14  ;;  %v622_v3 = vpop.eup %621 }
 0x128   :  { %625 = vrcp.f32 %v447_v13  ;;  %v624_v16 = vpop.eup %623  ;;  %v459_v21 = vadd.f32 1.0, %v622_v3 }
 0x129   :  { %627 = vrcp.f32 %v453_v15 }
 0x12a   :  { %629 = vrcp.f32 %v459_v21 }
 0x132   :  { %v626_v17 = vpop.eup %625 }
 0x133   :  { %v465_v19 = vmul.f32 %v626_v17, %v624_v16  ;;  %v628_v20 = vpop.eup %627 }
 0x134   :  { %v464_v22 = vmul.f32 %v628_v20, %v28_v18  ;;  %v630_v24 = vpop.eup %629 }
 0x136   :  { %v466_v23 = vadd.f32 %v465_v19, %v464_v22 }
 0x138   :  { %631 = vtanh.f32 %v466_v23  ;;  %472 = vst [vmem:[%s1077_s6] sm:$0xff] %v466_v23 }
 0x142   :  { %v632_v25 = vpop.eup %631 }
 0x143   :  { %v468_v26 = vmul.f32 %v632_v25, %v630_v24 }
 0x145   :  { %471 = vst [vmem:[%s1078_s5] sm:$0xff] %v468_v26 }

</bundles_post_ra>
